<compile_context>
chip_gen: v6e
topology: v6e:2x2x1
jax: 0.10.0
libtpu: 0.0.40
codegen_flags: <defaults>
</compile_context>

<pallas_src>
import functools

import jax
import jax.numpy as jnp
from jax.experimental import pallas as pl
from jax.experimental.pallas import tpu as pltpu


_TILE_CANDIDATES = (1024, 768, 512, 384, 256, 128)


def _cell_kernel(l_ref, r_ref, w1l_ref, w1r_ref, b1_ref, w2_ref, b2_ref,
                 gamma_ref, beta_ref, out_ref, *, d, d_pad, inv_d, ln_eps,
                 approx_gelu, mxu_dtype):
    f32 = jnp.float32
    Dp = d_pad

    l32 = l_ref[...].astype(f32)          # exact f32 gating operands
    r32 = r_ref[...].astype(f32)
    l_mx = l32.astype(mxu_dtype)          # MXU operands (bf16 by default)
    r_mx = r32.astype(mxu_dtype)

    # wcell1(concat([l, r])) == l @ W1l + r @ W1r + b1   (f32 accumulation)
    h = (jnp.dot(l_mx, w1l_ref[...], preferred_element_type=f32)
         + jnp.dot(r_mx, w1r_ref[...], preferred_element_type=f32)
         + b1_ref[...])

    if approx_gelu:
        h = jax.nn.gelu(h, approximate=True)          # tanh -> EUP slot
    else:
        # exact (erf-based) GELU, matching torch.nn.functional.gelu default
        h = 0.5 * h * (1.0 + jax.lax.erf(h * 0.7071067811865476))

    # wcell2: (tm, Hp) @ (Hp, 4*Dp) + b2  (MXU fed in the weights' dtype)
    c = jnp.dot(h.astype(w2_ref.dtype), w2_ref[...],
                preferred_element_type=f32) + b2_ref[...]

    # gate k lives in lanes [k*Dp, k*Dp + D); per-gate sigmoid feeds the FMA
    # directly (no (tm, 3*Dp) temporary kept live).
    f1 = jax.nn.sigmoid(c[:, 0 * Dp:0 * Dp + d])
    f2 = jax.nn.sigmoid(c[:, 1 * Dp:1 * Dp + d])
    ig = jax.nn.sigmoid(c[:, 2 * Dp:2 * Dp + d])
    parent = c[:, 3 * Dp:3 * Dp + d]
    s = f1 * l32 + f2 * r32 + ig * parent

    # two-pass LayerNorm over the true D lanes (biased variance, eps=1e-5)
    mu = jnp.sum(s, axis=-1, keepdims=True) * inv_d
    dlt = s - mu
    var = jnp.sum(dlt * dlt, axis=-1, keepdims=True) * inv_d
    xhat = dlt * jax.lax.rsqrt(var + ln_eps)
    out_ref[...] = (xhat * gamma_ref[...] + beta_ref[...]).astype(out_ref.dtype)


def _round_up(x, m):
    return (x + m - 1) // m * m


def _choose_tile_rows(M, max_tile_rows):
    """Large tile (amortize grid-step + MXU weight pushes), small round-up
    waste, and >= 2 grid steps when M allows (v7x megacore / pipeline depth)."""
    if M <= 128:
        return M                                   # one small full-rows block
    cands = [t for t in _TILE_CANDIDATES if t <= max_tile_rows] or [128]
    best, best_key = None, None
    for t in cands:
        g = -(-M // t)
        if g < 2 and M > 2 * cands[-1]:
            continue                               # keep both v7x TCs busy
        waste = (g * t - M) / (g * t)
        key = (0.0 if waste <= 0.125 else waste, -t)
        if best is None or key < best_key:
            best, best_key = t, key
    return best if best is not None else cands[-1]


def cell_layer_forward(l, r, params, *, tile_rows=None, mxu_dtype=jnp.bfloat16,
                       out_dtype=None, approx_gelu=False):
    """l, r: (N, S, D). Returns (N, S, D) in out_dtype (default: l.dtype)."""
    N, S, D = l.shape
    M = N * S
    H = params["b1"].shape[0]
    out_dtype = out_dtype if out_dtype is not None else l.dtype

    Dp = _round_up(D, 128)                 # lane-aligned gate-group stride
    Hp = _round_up(H, 128)                 # lane/contraction-aligned cell dim

    # l / r are fed unpadded & uncast (no extra HBM pad/convert pass).
    l2 = l.reshape(M, D)
    r2 = r.reshape(M, D)

    f32 = jnp.float32

    # W1 stored input-major (2D, H): y = x @ W1 + b1.  Split to avoid concat.
    w1 = params["w1"]
    w1l = jnp.pad(w1[:D], ((0, 0), (0, Hp - H))).astype(mxu_dtype)
    w1r = jnp.pad(w1[D:], ((0, 0), (0, Hp - H))).astype(mxu_dtype)
    b1 = jnp.pad(params["b1"], (0, Hp - H)).reshape(1, Hp).astype(f32)

    # W2 (H, 4D) / b2 (4D,): re-lay the 4 gate column groups on Dp boundaries.
    w2 = params["w2"].reshape(H, 4, D)
    w2p = jnp.zeros((Hp, 4, Dp), f32).at[:H, :, :D].set(w2)
    w2p = w2p.reshape(Hp, 4 * Dp).astype(mxu_dtype)
    b2 = params["b2"].reshape(4, D)
    b2p = jnp.zeros((4, Dp), f32).at[:, :D].set(b2).reshape(1, 4 * Dp)

    gamma = params["gamma"].reshape(1, D).astype(f32)
    beta = params["beta"].reshape(1, D).astype(f32)

    mxu_bytes = jnp.dtype(mxu_dtype).itemsize
    in_bytes = jnp.dtype(l.dtype).itemsize
    out_bytes = jnp.dtype(out_dtype).itemsize

    # Per-generation VMEM budget: ~75% of capacity (~48 MiB v7x, ~96 MiB v5e/v6e).
    try:
        vmem_cap = int(pltpu.get_tpu_info().vmem_capacity_bytes)
    except Exception:
        vmem_cap = 64 * 1024 * 1024
    budget = int(0.75 * vmem_cap)

    # Deeper streaming pipeline when HBM-bound (small Hp => short per-tile compute).
    in_nbuf = 3 if Hp <= 512 else 2

    def vmem_est(t):
        stream = in_nbuf * 2 * t * D * in_bytes            # l, r tiles
        stream += 2 * t * D * out_bytes                    # out tiles
        weights = (2 * D * Hp + Hp * 4 * Dp) * mxu_bytes   # W1l, W1r, W2 (resident)
        weights += (Hp + 4 * Dp + 2 * D) * 4               # b1, b2, gamma, beta
        inter = t * (2 * D * mxu_bytes                     # bf16 MXU copies of l, r
                     + Hp * (4 + mxu_bytes)                # h f32 + h cast
                     + 4 * Dp * 4                          # c f32
                     + 8 * D * 4)                          # gates / s / xhat temps
        return stream + weights + inter

    if tile_rows is None:
        max_tile = 128
        for t in _TILE_CANDIDATES:                         # largest that fits budget
            if vmem_est(t) <= budget:
                max_tile = t
                break
        tile_rows = _choose_tile_rows(M, max_tile)

    grid = (pl.cdiv(M, tile_rows),)
    in_nbuf = min(in_nbuf, max(2, grid[0]))                # no deep buffers on tiny grids

    est = vmem_est(tile_rows)
    vmem_limit = int(min(budget, max(2 * est, 16 * 1024 * 1024)))

    kernel = functools.partial(_cell_kernel, d=D, d_pad=Dp, inv_d=1.0 / D,
                               ln_eps=1e-5, approx_gelu=approx_gelu,
                               mxu_dtype=mxu_dtype)

    row_spec = pl.BlockSpec((tile_rows, D), lambda i: (i, 0),
                            pipeline_mode=pl.Buffered(in_nbuf))

    def weight_spec(shape):
        # constant index_map -> single resident copy (no double buffer)
        return pl.BlockSpec(shape, lambda i: (0, 0), pipeline_mode=pl.Buffered(1))

    cost = pl.CostEstimate(
        flops=int(4 * M * D * Hp + 8 * M * Hp * Dp),       # two MXU matmuls
        transcendentals=int(M * (Hp + 3 * D)),             # gelu + gate sigmoids
        bytes_accessed=int(2 * M * D * in_bytes + M * D * out_bytes
                           + (2 * D * Hp + Hp * 4 * Dp) * mxu_bytes),
    )

    out = pl.pallas_call(
        kernel,
        out_shape=jax.ShapeDtypeStruct((M, D), out_dtype),
        grid_spec=pltpu.PrefetchScalarGridSpec(
            num_scalar_prefetch=0,
            grid=grid,
            in_specs=[
                row_spec,                      # l tile (f32, unpadded)
                row_spec,                      # r tile
                weight_spec((D, Hp)),          # W1l
                weight_spec((D, Hp)),          # W1r
                weight_spec((1, Hp)),          # b1
                weight_spec((Hp, 4 * Dp)),     # W2 (gate groups on Dp boundaries)
                weight_spec((1, 4 * Dp)),      # b2
                weight_spec((1, D)),           # gamma
                weight_spec((1, D)),           # beta
            ],
            out_specs=pl.BlockSpec((tile_rows, D), lambda i: (i, 0)),
        ),
        compiler_params=pltpu.CompilerParams(
            dimension_semantics=("parallel",),
            vmem_limit_bytes=vmem_limit),
        cost_estimate=cost,
    )(l2, r2, w1l, w1r, b1, w2p, b2p, gamma, beta)

    return out.reshape(N, S, D)


def init_params(key, hidden_dim, cell_hidden_dim):
    """Deterministic synthetic parameters (shapes match the PyTorch module)."""
    k1, k2, k3, k4 = jax.random.split(key, 4)
    D, H = hidden_dim, cell_hidden_dim
    # stored input-major: y = x @ W + b
    w1 = jax.random.normal(k1, (2 * D, H), jnp.float32) * (1.0 / jnp.sqrt(2.0 * D))
    b1 = jax.random.normal(k2, (H,), jnp.float32) * 0.01
    w2 = jax.random.normal(k3, (H, 4 * D), jnp.float32) * (1.0 / jnp.sqrt(1.0 * H))
    b2 = jax.random.normal(k4, (4 * D,), jnp.float32) * 0.01
    gamma = jnp.ones((D,), jnp.float32)
    beta = jnp.zeros((D,), jnp.float32)
    return {"w1": w1, "b1": b1, "w2": w2, "b2": b2, "gamma": gamma, "beta": beta}


def _reference(l, r, p):
    """Pure-JAX f32 reference (eval-mode PyTorch forward)."""
    x = jnp.concatenate([l, r], axis=2)
    h = jax.nn.gelu(x @ p["w1"] + p["b1"], approximate=False)
    c = h @ p["w2"] + p["b2"]
    N, S, D = l.shape
    c = c.reshape(N, S, 4, D)
    f1 = jax.nn.sigmoid(c[:, :, 0, :])
    f2 = jax.nn.sigmoid(c[:, :, 1, :])
    ig = jax.nn.sigmoid(c[:, :, 2, :])
    parent = c[:, :, 3, :]
    s = f1 * l + f2 * r + ig * parent
    mu = jnp.mean(s, axis=-1, keepdims=True)
    var = jnp.mean((s - mu) ** 2, axis=-1, keepdims=True)
    return (s - mu) / jnp.sqrt(var + 1e-5) * p["gamma"] + p["beta"]


if __name__ == "__main__":
    N, S, D, H = 2, 8, 32, 64          # batch, seq, hidden_dim, cell_hidden_dim
    key = jax.random.PRNGKey(0)
    kl, kr, kp = jax.random.split(key, 3)
    l = jax.random.normal(kl, (N, S, D), jnp.float32)
    r = jax.random.normal(kr, (N, S, D), jnp.float32)
    params = init_params(kp, D, H)

    # perf-default path: bf16 MXU operands, f32 accumulation, exact GELU
    out = jax.block_until_ready(cell_layer_forward(l, r, params))
    # exact-parity path (f32 MXU operands) for a tight numerical check
    out_f32 = jax.block_until_ready(
        cell_layer_forward(l, r, params, mxu_dtype=jnp.float32))
    # tanh-GELU fast path (EUP) — sanity-run only
    out_tanh = jax.block_until_ready(
        cell_layer_forward(l, r, params, approx_gelu=True))

    ref = _reference(l, r, params)
    assert out.shape == (N, S, D)
    assert jnp.allclose(out_f32, ref, atol=1e-4, rtol=1e-4), "f32 path mismatch vs reference"
    assert float(jnp.max(jnp.abs(out - ref))) < 0.1, "bf16 MXU path out of tolerance"
    assert float(jnp.max(jnp.abs(out_tanh - ref))) < 0.1, "tanh-GELU path out of tolerance"
    print("KERNEL_OK")
</pallas_src>

<mosaic_0001>
module attributes {stable_mosaic.version = 11 : i64} {
  func.func @_cell_kernel(%arg0: i32, %arg1: memref<16x32xf32, #tpu.memory_space<vmem>>, %arg2: memref<16x32xf32, #tpu.memory_space<vmem>>, %arg3: memref<32x128xbf16, #tpu.memory_space<vmem>>, %arg4: memref<32x128xbf16, #tpu.memory_space<vmem>>, %arg5: memref<1x128xf32, #tpu.memory_space<vmem>>, %arg6: memref<128x512xbf16, #tpu.memory_space<vmem>>, %arg7: memref<1x512xf32, #tpu.memory_space<vmem>>, %arg8: memref<1x32xf32, #tpu.memory_space<vmem>>, %arg9: memref<1x32xf32, #tpu.memory_space<vmem>>, %arg10: memref<16x32xf32, #tpu.memory_space<vmem>>) attributes {dimension_semantics = [#tpu.dimension_semantics<parallel>], iteration_bounds = array<i64: 1>, scalar_prefetch = 0 : i64, scratch_operands = 0 : i64, tpu.core_type = #tpu.core_type<tc>, window_params = [{pipeline_mode = #tpu.pipeline_mode<double_buffered>, transform_indices = @transform_0, window_bounds = array<i64: 16, 32>}, {pipeline_mode = #tpu.pipeline_mode<double_buffered>, transform_indices = @transform_1, window_bounds = array<i64: 16, 32>}, {pipeline_mode = #tpu.pipeline_mode<synchronous>, transform_indices = @transform_2, window_bounds = array<i64: 32, 128>}, {pipeline_mode = #tpu.pipeline_mode<synchronous>, transform_indices = @transform_3, window_bounds = array<i64: 32, 128>}, {pipeline_mode = #tpu.pipeline_mode<synchronous>, transform_indices = @transform_4, window_bounds = array<i64: 1, 128>}, {pipeline_mode = #tpu.pipeline_mode<synchronous>, transform_indices = @transform_5, window_bounds = array<i64: 128, 512>}, {pipeline_mode = #tpu.pipeline_mode<synchronous>, transform_indices = @transform_6, window_bounds = array<i64: 1, 512>}, {pipeline_mode = #tpu.pipeline_mode<synchronous>, transform_indices = @transform_7, window_bounds = array<i64: 1, 32>}, {pipeline_mode = #tpu.pipeline_mode<synchronous>, transform_indices = @transform_8, window_bounds = array<i64: 1, 32>}, {transform_indices = @transform_9, window_bounds = array<i64: 16, 32>}]} {
    %c0 = arith.constant 0 : index
    %c0_0 = arith.constant 0 : index
    %0 = vector.load %arg1[%c0, %c0_0] : memref<16x32xf32, #tpu.memory_space<vmem>>, vector<16x32xf32>
    %c0_1 = arith.constant 0 : index
    %c0_2 = arith.constant 0 : index
    %1 = vector.load %arg2[%c0_1, %c0_2] : memref<16x32xf32, #tpu.memory_space<vmem>>, vector<16x32xf32>
    %2 = arith.truncf %0 : vector<16x32xf32> to vector<16x32xbf16>
    %3 = arith.truncf %1 : vector<16x32xf32> to vector<16x32xbf16>
    %c0_3 = arith.constant 0 : index
    %c0_4 = arith.constant 0 : index
    %4 = vector.load %arg3[%c0_3, %c0_4] : memref<32x128xbf16, #tpu.memory_space<vmem>>, vector<32x128xbf16>
    %cst = arith.constant dense<0.000000e+00> : vector<16x128xf32>
    %5 = tpu.matmul %2, %4, %cst {dimension_numbers = #tpu.dot_dimension_numbers<[1], [0], [0], [1], [0, 0, 1, 1], [], []>} : vector<16x32xbf16>, vector<32x128xbf16>, vector<16x128xf32> -> vector<16x128xf32>
    %c0_5 = arith.constant 0 : index
    %c0_6 = arith.constant 0 : index
    %6 = vector.load %arg4[%c0_5, %c0_6] : memref<32x128xbf16, #tpu.memory_space<vmem>>, vector<32x128xbf16>
    %cst_7 = arith.constant dense<0.000000e+00> : vector<16x128xf32>
    %7 = tpu.matmul %3, %6, %cst_7 {dimension_numbers = #tpu.dot_dimension_numbers<[1], [0], [0], [1], [0, 0, 1, 1], [], []>} : vector<16x32xbf16>, vector<32x128xbf16>, vector<16x128xf32> -> vector<16x128xf32>
    %8 = arith.addf %5, %7 : vector<16x128xf32>
    %c0_8 = arith.constant 0 : index
    %c0_9 = arith.constant 0 : index
    %9 = vector.load %arg5[%c0_8, %c0_9] : memref<1x128xf32, #tpu.memory_space<vmem>>, vector<1x128xf32>
    %10 = vector.broadcast %9 : vector<1x128xf32> to vector<16x128xf32>
    %11 = arith.addf %8, %10 : vector<16x128xf32>
    %cst_10 = arith.constant 5.000000e-01 : f32
    %12 = vector.broadcast %cst_10 : f32 to vector<16x128xf32>
    %13 = arith.mulf %12, %11 : vector<16x128xf32>
    %cst_11 = arith.constant 0.707106769 : f32
    %14 = vector.broadcast %cst_11 : f32 to vector<16x128xf32>
    %15 = arith.mulf %11, %14 : vector<16x128xf32>
    %16 = math.erf %15 : vector<16x128xf32>
    %cst_12 = arith.constant 1.000000e+00 : f32
    %17 = vector.broadcast %cst_12 : f32 to vector<16x128xf32>
    %18 = arith.addf %17, %16 : vector<16x128xf32>
    %19 = arith.mulf %13, %18 : vector<16x128xf32>
    %20 = arith.truncf %19 : vector<16x128xf32> to vector<16x128xbf16>
    %c0_13 = arith.constant 0 : index
    %c0_14 = arith.constant 0 : index
    %21 = vector.load %arg6[%c0_13, %c0_14] : memref<128x512xbf16, #tpu.memory_space<vmem>>, vector<128x512xbf16>
    %cst_15 = arith.constant dense<0.000000e+00> : vector<16x512xf32>
    %22 = tpu.matmul %20, %21, %cst_15 {dimension_numbers = #tpu.dot_dimension_numbers<[1], [0], [0], [1], [0, 0, 1, 1], [], []>} : vector<16x128xbf16>, vector<128x512xbf16>, vector<16x512xf32> -> vector<16x512xf32>
    %c0_16 = arith.constant 0 : index
    %c0_17 = arith.constant 0 : index
    %23 = vector.load %arg7[%c0_16, %c0_17] : memref<1x512xf32, #tpu.memory_space<vmem>>, vector<1x512xf32>
    %24 = vector.broadcast %23 : vector<1x512xf32> to vector<16x512xf32>
    %25 = arith.addf %22, %24 : vector<16x512xf32>
    %26 = vector.extract_strided_slice %25 {offsets = [0, 0], sizes = [16, 32], strides = [1, 1]} : vector<16x512xf32> to vector<16x32xf32>
    %27 = arith.negf %26 : vector<16x32xf32>
    %28 = math.exp %27 : vector<16x32xf32>
    %cst_18 = arith.constant 1.000000e+00 : f32
    %29 = vector.broadcast %cst_18 : f32 to vector<16x32xf32>
    %30 = arith.addf %29, %28 : vector<16x32xf32>
    %31 = arith.divf %29, %30 : vector<16x32xf32>
    %32 = vector.extract_strided_slice %25 {offsets = [0, 128], sizes = [16, 32], strides = [1, 1]} : vector<16x512xf32> to vector<16x32xf32>
    %33 = arith.negf %32 : vector<16x32xf32>
    %34 = math.exp %33 : vector<16x32xf32>
    %cst_19 = arith.constant 1.000000e+00 : f32
    %35 = vector.broadcast %cst_19 : f32 to vector<16x32xf32>
    %36 = arith.addf %35, %34 : vector<16x32xf32>
    %37 = arith.divf %35, %36 : vector<16x32xf32>
    %38 = vector.extract_strided_slice %25 {offsets = [0, 256], sizes = [16, 32], strides = [1, 1]} : vector<16x512xf32> to vector<16x32xf32>
    %39 = arith.negf %38 : vector<16x32xf32>
    %40 = math.exp %39 : vector<16x32xf32>
    %cst_20 = arith.constant 1.000000e+00 : f32
    %41 = vector.broadcast %cst_20 : f32 to vector<16x32xf32>
    %42 = arith.addf %41, %40 : vector<16x32xf32>
    %43 = arith.divf %41, %42 : vector<16x32xf32>
    %44 = vector.extract_strided_slice %25 {offsets = [0, 384], sizes = [16, 32], strides = [1, 1]} : vector<16x512xf32> to vector<16x32xf32>
    %45 = arith.mulf %31, %0 : vector<16x32xf32>
    %46 = arith.mulf %37, %1 : vector<16x32xf32>
    %47 = arith.addf %45, %46 : vector<16x32xf32>
    %48 = arith.mulf %43, %44 : vector<16x32xf32>
    %49 = arith.addf %47, %48 : vector<16x32xf32>
    %cst_21 = arith.constant dense<0.000000e+00> : vector<16xf32>
    %50 = vector.multi_reduction <add>, %49, %cst_21 [1] : vector<16x32xf32> to vector<16xf32>
    %51 = vector.shape_cast %50 : vector<16xf32> to vector<16x1xf32>
    %cst_22 = arith.constant 3.125000e-02 : f32
    %52 = vector.broadcast %cst_22 : f32 to vector<16x1xf32>
    %53 = arith.mulf %51, %52 : vector<16x1xf32>
    %54 = vector.broadcast %53 : vector<16x1xf32> to vector<16x32xf32>
    %55 = arith.subf %49, %54 : vector<16x32xf32>
    %56 = arith.mulf %55, %55 : vector<16x32xf32>
    %cst_23 = arith.constant dense<0.000000e+00> : vector<16xf32>
    %57 = vector.multi_reduction <add>, %56, %cst_23 [1] : vector<16x32xf32> to vector<16xf32>
    %58 = vector.shape_cast %57 : vector<16xf32> to vector<16x1xf32>
    %cst_24 = arith.constant 3.125000e-02 : f32
    %59 = vector.broadcast %cst_24 : f32 to vector<16x1xf32>
    %60 = arith.mulf %58, %59 : vector<16x1xf32>
    %cst_25 = arith.constant 9.99999974E-6 : f32
    %61 = vector.broadcast %cst_25 : f32 to vector<16x1xf32>
    %62 = arith.addf %60, %61 : vector<16x1xf32>
    %63 = math.rsqrt %62 : vector<16x1xf32>
    %64 = vector.broadcast %63 : vector<16x1xf32> to vector<16x32xf32>
    %65 = arith.mulf %55, %64 : vector<16x32xf32>
    %c0_26 = arith.constant 0 : index
    %c0_27 = arith.constant 0 : index
    %66 = vector.load %arg8[%c0_26, %c0_27] : memref<1x32xf32, #tpu.memory_space<vmem>>, vector<1x32xf32>
    %67 = vector.broadcast %66 : vector<1x32xf32> to vector<16x32xf32>
    %68 = arith.mulf %65, %67 : vector<16x32xf32>
    %c0_28 = arith.constant 0 : index
    %c0_29 = arith.constant 0 : index
    %69 = vector.load %arg9[%c0_28, %c0_29] : memref<1x32xf32, #tpu.memory_space<vmem>>, vector<1x32xf32>
    %70 = vector.broadcast %69 : vector<1x32xf32> to vector<16x32xf32>
    %71 = arith.addf %68, %70 : vector<16x32xf32>
    %c0_30 = arith.constant 0 : index
    %c0_31 = arith.constant 0 : index
    %72 = vector.load %arg10[%c0_30, %c0_31] : memref<16x32xf32, #tpu.memory_space<vmem>>, vector<16x32xf32>
    tpu.vector_store %arg10[%c0_30, %c0_31], %71 {strides = array<i32>} : memref<16x32xf32, #tpu.memory_space<vmem>>, vector<16x32xf32>,
    return
  }
  func.func @transform_0(%arg0: i32) -> (i32, i32) {
    %c0_i32 = arith.constant 0 : i32
    %c0_i32_0 = arith.constant 0 : i32
    return %arg0, %c0_i32 : i32, i32
  }
  func.func @transform_1(%arg0: i32) -> (i32, i32) {
    %c0_i32 = arith.constant 0 : i32
    %c0_i32_0 = arith.constant 0 : i32
    return %arg0, %c0_i32 : i32, i32
  }
  func.func @transform_2(%arg0: i32) -> (i32, i32) {
    %c0_i32 = arith.constant 0 : i32
    %c0_i32_0 = arith.constant 0 : i32
    %c0_i32_1 = arith.constant 0 : i32
    return %c0_i32, %c0_i32_0 : i32, i32
  }
  func.func @transform_3(%arg0: i32) -> (i32, i32) {
    %c0_i32 = arith.constant 0 : i32
    %c0_i32_0 = arith.constant 0 : i32
    %c0_i32_1 = arith.constant 0 : i32
    return %c0_i32, %c0_i32_0 : i32, i32
  }
  func.func @transform_4(%arg0: i32) -> (i32, i32) {
    %c0_i32 = arith.constant 0 : i32
    %c0_i32_0 = arith.constant 0 : i32
    %c0_i32_1 = arith.constant 0 : i32
    return %c0_i32, %c0_i32_0 : i32, i32
  }
  func.func @transform_5(%arg0: i32) -> (i32, i32) {
    %c0_i32 = arith.constant 0 : i32
    %c0_i32_0 = arith.constant 0 : i32
    %c0_i32_1 = arith.constant 0 : i32
    return %c0_i32, %c0_i32_0 : i32, i32
  }
  func.func @transform_6(%arg0: i32) -> (i32, i32) {
    %c0_i32 = arith.constant 0 : i32
    %c0_i32_0 = arith.constant 0 : i32
    %c0_i32_1 = arith.constant 0 : i32
    return %c0_i32, %c0_i32_0 : i32, i32
  }
  func.func @transform_7(%arg0: i32) -> (i32, i32) {
    %c0_i32 = arith.constant 0 : i32
    %c0_i32_0 = arith.constant 0 : i32
    %c0_i32_1 = arith.constant 0 : i32
    return %c0_i32, %c0_i32_0 : i32, i32
  }
  func.func @transform_8(%arg0: i32) -> (i32, i32) {
    %c0_i32 = arith.constant 0 : i32
    %c0_i32_0 = arith.constant 0 : i32
    %c0_i32_1 = arith.constant 0 : i32
    return %c0_i32, %c0_i32_0 : i32, i32
  }
  func.func @transform_9(%arg0: i32) -> (i32, i32) {
    %c0_i32 = arith.constant 0 : i32
    %c0_i32_0 = arith.constant 0 : i32
    return %arg0, %c0_i32 : i32, i32
  }
}

</mosaic_0001>

<bundles_post_ra>
// kernel: tpu_custom_call.1
= control target key start
LH: loop header
LB: loop body
LE: loop exit
PB: predicated region body
PF: predicated region fallthrough
CT: control target
= control target key end

     0   :  { %14 = vsyncpa [#allocation3], 0  ;;  %s1084_s0 = inlined_call_operand.hbm [shape: f32[16,32], index: 0, kind: input, shape index: {}]   ;;  %s1085_s1 = inlined_call_operand.hbm [shape: f32[16,32], index: 1, kind: input, shape index: {}]   ;;  %s1086_s2 = inlined_call_operand.hbm [shape: bf16[32,128], index: 2, kind: input, shape index: {}]   ;;  %s1087_s3 = inlined_call_operand.hbm [shape: bf16[32,128], index: 3, kind: input, shape index: {}]   ;;  %s1088_s4 = inlined_call_operand.vmem [shape: f32[1,128], index: 4, kind: input, shape index: {}]   ;;  %s1089_s5 = inlined_call_operand.hbm [shape: bf16[128,512], index: 5, kind: input, shape index: {}]   ;;  %s1090_s6 = inlined_call_operand.vmem [shape: f32[1,512], index: 6, kind: input, shape index: {}]   ;;  %s1091_s7 = inlined_call_operand.vmem [shape: f32[1,32], index: 7, kind: input, shape index: {}]   ;;  %s1092_s8 = inlined_call_operand.vmem [shape: f32[1,32], index: 8, kind: input, shape index: {}]   ;;  %s1093_s9 = inlined_call_operand.hbm [shape: f32[16,32], index: 9, kind: output, shape index: {}]  }
   0x1   :  { %15 = vsyncpa [#allocation6], 0 }
   0x2   :  { %16 = vsyncpa [#allocation9], 0 }
   0x3   :  { %17 = vsyncpa [#allocation4], 0  ;;  %s956_s30 = smov [#allocation5]  }
   0x4   :  { %s35_s10 = sshll.u32 %s956_s30, 4  ;;  %s36_s10 = int_to_ptr.vmem [resolvable:$true] %s35_s10 }
   0x5   :  { %s836_s11 = scalar_lea.vmem %s36_s10, 256  ;;  %p841_p1 = scmp.lt.s32.totalorder %s36_s10, %s36_s10 }
   0x6   :  { %p837_p0 = scmp.ne.s32.totalorder %s36_s10, %s836_s11  ;;  %p842_p2 = scmp.lt.s32.totalorder %s836_s11, %s836_s11 }
   0x8   :  { %p843_p3 = por %p842_p2, %p841_p1 }
   0xa   :  { %p844_p4 = pnand %p843_p3, %p837_p0 }
   0xc   :  { %847 = shalt.err (!%p844_p4)
}
   0xd   :  { %s957_s12 = smov 128   ;;  %s958_s13 = smov 8  }
   0xe   :  { %41 = dma.hbm_to_vmem [thread:$0]  %s1085_s1, 256, %s36_s10, [#allocation6], %s957_s12, %s957_s12, %s958_s13  }
   0xf   :  { %s959_s16 = smov [#allocation8]   ;;  %s960_s18 = smov [#allocation2]  }
  0x10   :  { %s59_s17 = sshll.u32 %s959_s16, 4  ;;  %s23_s19 = sshll.u32 %s960_s18, 4  ;;  %s60_s17 = int_to_ptr.vmem [resolvable:$true] %s59_s17  ;;  %s24_s19 = int_to_ptr.vmem [resolvable:$true] %s23_s19 }
  0x11   :  { %s856_s20 = scalar_lea.vmem %s60_s17, 256  ;;  %p861_p6 = scmp.lt.s32.totalorder %s60_s17, %s60_s17 }
  0x12   :  { %p857_p5 = scmp.ne.s32.totalorder %s60_s17, %s856_s20  ;;  %p862_p7 = scmp.lt.s32.totalorder %s856_s20, %s856_s20 }
  0x14   :  { %p863_p8 = por %p862_p7, %p861_p6 }
  0x16   :  { %p864_p9 = pnand %p863_p8, %p857_p5 }
  0x18   :  { %867 = shalt.err (!%p864_p9)
}
  0x19   :  { %s961_s21 = smov 64   ;;  %s962_s22 = smov 4  }
  0x1a   :  { %65 = dma.hbm_to_vmem [thread:$0]  %s1087_s3, 256, %s60_s17, [#allocation9], %s961_s21, %s961_s21, %s962_s22  }
  0x1b   :  { %s876_s1 = scalar_lea.vmem %s24_s19, 256  ;;  %p881_p11 = scmp.lt.s32.totalorder %s24_s19, %s24_s19 }
  0x1c   :  { %p877_p10 = scmp.ne.s32.totalorder %s24_s19, %s876_s1  ;;  %p882_p12 = scmp.lt.s32.totalorder %s876_s1, %s876_s1 }
  0x1e   :  { %p883_p13 = por %p882_p12, %p881_p11 }
  0x20   :  { %p884_p0 = pnand %p883_p13, %p877_p10 }
  0x22   :  { %887 = shalt.err (!%p884_p0)
}
  0x23   :  { %29 = dma.hbm_to_vmem [thread:$0]  %s1084_s0, 256, %s24_s19, [#allocation3], %s957_s12, %s957_s12, %s958_s13  }
  0x24   :  { %s963_s27 = smov [#allocation7]   ;;  %s964_s29 = smov [#allocation10]  }
  0x25   :  { %s47_s28 = sshll.u32 %s963_s27, 4  ;;  %s73_s3 = sshll.u32 %s964_s29, 4  ;;  %s48_s28 = int_to_ptr.vmem [resolvable:$true] %s47_s28  ;;  %s74_s3 = int_to_ptr.vmem [resolvable:$true] %s73_s3 }
  0x26   :  { %s896_s30 = scalar_lea.vmem %s48_s28, 256  ;;  %p901_p2 = scmp.lt.s32.totalorder %s48_s28, %s48_s28 }
  0x27   :  { %p897_p1 = scmp.ne.s32.totalorder %s48_s28, %s896_s30  ;;  %p902_p3 = scmp.lt.s32.totalorder %s896_s30, %s896_s30 }
  0x29   :  { %p903_p4 = por %p902_p3, %p901_p2 }
  0x2b   :  { %p904_p5 = pnand %p903_p4, %p897_p1 }
  0x2d   :  { %907 = shalt.err (!%p904_p5)
}
  0x2e   :  { %53 = dma.hbm_to_vmem [thread:$0]  %s1086_s2, 256, %s48_s28, [#allocation6], %s961_s21, %s961_s21, %s962_s22  }
  0x2f   :  { %s916_s14 = scalar_lea.vmem %s74_s3, 4096  ;;  %p921_p7 = scmp.lt.s32.totalorder %s74_s3, %s74_s3 }
  0x30   :  { %p917_p6 = scmp.ne.s32.totalorder %s74_s3, %s916_s14  ;;  %p922_p8 = scmp.lt.s32.totalorder %s916_s14, %s916_s14 }
  0x32   :  { %p923_p9 = por %p922_p8, %p921_p7 }
  0x34   :  { %p924_p10 = pnand %p923_p9, %p917_p6 }
  0x36   :  { %927 = shalt.err (!%p924_p10)
}
  0x37   :  { %s965_s0 = smov 256   ;;  %s966_s15 = smov 16  }
  0x38   :  { %79 = dma.hbm_to_vmem [thread:$0]  %s1089_s5, 4096, %s74_s3, [#allocation9], %s965_s0, %s965_s0, %s966_s15  }
  0x39   :  { %948 = dma.done.wait [#allocation3], 256  }
  0x3a   :  { %949 = vsyncadd [#allocation3], 4294967040 }
  0x3b   :  { %950 = dma.done.wait [#allocation6], 512  }
  0x3c   :  { %951 = vsyncadd [#allocation6], 4294966784 }
  0x3d   :  { %952 = dma.done.wait [#allocation9], 4352  }
  0x3e   :  { %953 = vsyncadd [#allocation9], 4294962944  ;;  %v967_v0 = vmov 0.0   ;;  %vm968_vm0 = vmmov 0   ;;  %v744_v1 = vld [vmem:[#allocation8 + $0x8] sm:$0xff]   ;;  %v745_v2 = vld [vmem:[#allocation7 + $0x8] sm:$0xff]  }
  0x3f   :  { %713 = vmatprep.subr.bf16.mxu0 %v967_v0  ;;  %721 = vmatprep.subr.bf16.mxu1 %v967_v0  ;;  %v746_v3 = vld [vmem:[#allocation8] sm:$0xff]   ;;  %v747_v4 = vld [vmem:[#allocation7] sm:$0xff]   ;;  %v1044_v6 = vld [vmem:[#allocation5 + $0x8] sm:$0xff]  ;;  %vm128_vm1 = vcmask 261120   ;;  %v969_v43 = vmov 0   ;;  %s970_s22 = smov [#allocation11]  }
  0x40   :  { %717 = vmatprep.mubr.msk.bf16.mxu0 %vm968_vm0, %v967_v0  ;;  %725 = vmatprep.mubr.msk.bf16.mxu1 %vm968_vm0, %v967_v0  ;;  %v1042_v5 = vld [vmem:[#allocation5] sm:$0xff]  ;;  %v1046_v7 = vld [vmem:[#allocation2] sm:$0xff]  ;;  %v1050_v9 = vld [vmem:[#allocation2 + $0x8] sm:$0xff]  ;;  %s646_s23 = sshll.u32 %s970_s22, 4  ;;  %s647_s23 = int_to_ptr.vmem [resolvable:$true] %s646_s23 }
  0x41   :  { %714 = vmatpush3.bf16.msra.mxu0 %v744_v1  ;;  %722 = vmatpush3.bf16.msra.mxu1 %v745_v2  ;;  %v107_v8 = vpack.c.bf16 %v1044_v6, %v1042_v5  ;;  %v106_v10 = vpack.c.bf16 %v1050_v9, %v1046_v7  ;;  %v748_v11 = vld [vmem:[#allocation10 + $0xe0] ss:$16 sps:$4 sm:$0xff]   ;;  %v750_v12 = vld [vmem:[#allocation10 + $0xe4] ss:$16 sps:$4 sm:$0xff]   ;;  %v751_v13 = vld [vmem:[#allocation10 + $0xe8] ss:$16 sps:$4 sm:$0xff]   ;;  %p933_p12 = scmp.lt.s32.totalorder %s647_s23, %s647_s23 }
  0x42   :  { %715 = vmatprep.subr.bf16.mxu0 %v967_v0  ;;  %723 = vmatprep.subr.bf16.mxu1 %v967_v0  ;;  %v753_v14 = vld [vmem:[#allocation10 + $0xec] ss:$16 sps:$4 sm:$0xff]   ;;  %v756_v15 = vld [vmem:[#allocation10 + $0xc4] ss:$16 sps:$4 sm:$0xff]   ;;  %v754_v17 = vld [vmem:[#allocation10 + $0xc0] ss:$16 sps:$4 sm:$0xff]  }
  0x43   :  { %v759_v16 = vld [vmem:[#allocation10 + $0xcc] ss:$16 sps:$4 sm:$0xff]   ;;  %v757_v18 = vld [vmem:[#allocation10 + $0xc8] ss:$16 sps:$4 sm:$0xff]   ;;  %v762_v19 = vld [vmem:[#allocation10 + $0xa4] ss:$16 sps:$4 sm:$0xff]  }
  0x44   :  { %v765_v20 = vld [vmem:[#allocation10 + $0xac] ss:$16 sps:$4 sm:$0xff]   ;;  %v760_v21 = vld [vmem:[#allocation10 + $0xa0] ss:$16 sps:$4 sm:$0xff]   ;;  %v763_v22 = vld [vmem:[#allocation10 + $0xa8] ss:$16 sps:$4 sm:$0xff]  }
  0x45   :  { %716 = vmatpush3.bf16.msra.mxu0 %v746_v3  ;;  %724 = vmatpush3.bf16.msra.mxu1 %v747_v4  ;;  %v768_v23 = vld [vmem:[#allocation10 + $0x84] ss:$16 sps:$4 sm:$0xff]   ;;  %v771_v24 = vld [vmem:[#allocation10 + $0x8c] ss:$16 sps:$4 sm:$0xff]   ;;  %v766_v25 = vld [vmem:[#allocation10 + $0x80] ss:$16 sps:$4 sm:$0xff]   ;;  %v283_v4 = vlaneseq }
  0x46   :  { %463 = vmatprep.subr.bf16.mxu0 %v750_v12  ;;  %506 = vmatprep.subr.bf16.mxu1 %v753_v14  ;;  %v769_v26 = vld [vmem:[#allocation10 + $0x88] ss:$16 sps:$4 sm:$0xff]   ;;  %v774_v27 = vld [vmem:[#allocation10 + $0x64] ss:$16 sps:$4 sm:$0xff]   ;;  %v777_v28 = vld [vmem:[#allocation10 + $0x6c] ss:$16 sps:$4 sm:$0xff]  }
  0x47   :  { %v772_v29 = vld [vmem:[#allocation10 + $0x60] ss:$16 sps:$4 sm:$0xff]   ;;  %v775_v30 = vld [vmem:[#allocation10 + $0x68] ss:$16 sps:$4 sm:$0xff]   ;;  %v780_v31 = vld [vmem:[#allocation10 + $0x44] ss:$16 sps:$4 sm:$0xff]  }
  0x48   :  { %718 = vmatmul.mubr.msk.bf16.vlgmr.msra.gmra.mxu0 %vm128_vm1, %v107_v8  ;;  %726 = vmatmul.mubr.msk.bf16.vlgmr.msra.gmra.mxu1 %vm128_vm1, %v106_v10  ;;  %v783_v32 = vld [vmem:[#allocation10 + $0x4c] ss:$16 sps:$4 sm:$0xff]   ;;  %v778_v33 = vld [vmem:[#allocation10 + $0x40] ss:$16 sps:$4 sm:$0xff]   ;;  %v781_v34 = vld [vmem:[#allocation10 + $0x48] ss:$16 sps:$4 sm:$0xff]  }
  0x49   :  { %464 = vmatpush1.bf16.msra.mxu0 %v748_v11  ;;  %507 = vmatpush1.bf16.msra.mxu1 %v751_v13  ;;  %v786_v35 = vld [vmem:[#allocation10 + $0x24] ss:$16 sps:$4 sm:$0xff]   ;;  %v789_v36 = vld [vmem:[#allocation10 + $0x2c] ss:$16 sps:$4 sm:$0xff]   ;;  %v784_v37 = vld [vmem:[#allocation10 + $0x20] ss:$16 sps:$4 sm:$0xff]  }
  0x4a   :  { %465 = vmatprep.subr.bf16.mxu0 %v756_v15  ;;  %508 = vmatprep.subr.bf16.mxu1 %v759_v16  ;;  %v787_v38 = vld [vmem:[#allocation10 + $0x28] ss:$16 sps:$4 sm:$0xff]   ;;  %v792_v39 = vld [vmem:[#allocation10 + $0x4] ss:$16 sps:$4 sm:$0xff]   ;;  %v795_v40 = vld [vmem:[#allocation10 + $0xc] ss:$16 sps:$4 sm:$0xff]  }
  0x4b   :  { %v790_v41 = vld [vmem:[#allocation10] ss:$16 sps:$4 sm:$0xff]   ;;  %v793_v42 = vld [vmem:[#allocation10 + $0x8] ss:$16 sps:$4 sm:$0xff]   ;;  %495 = vmatprep.mubr.bf16.mxu0 %v969_v43  ;;  %538 = vmatprep.mubr.bf16.mxu1 %v969_v43  ;;  %v284_v8 = vshrl.u32 %v283_v4, 7  ;;  %s928_s24 = scalar_lea.vmem %s647_s23, 256 }
  0x4c   :  { %v666_v46 = vld [vmem:[%s1088_s4] ss:$0 sm:$0xff]  ;;  %p929_p11 = scmp.ne.s32.totalorder %s647_s23, %s928_s24  ;;  %p934_p13 = scmp.lt.s32.totalorder %s928_s24, %s928_s24 }
  0x4d   :  { %466 = vmatpush1.bf16.msra.mxu0 %v754_v17  ;;  %509 = vmatpush1.bf16.msra.mxu1 %v757_v18  ;;  %v285_v10 = vsub.s32 0, %v284_v8  ;;  %v293_v11 = vsub.s32 2, %v284_v8  ;;  %v281_v12 = vld [vmem:[%s1090_s6] sm:$0xf]  ;;  %v289_v13 = vsub.s32 1, %v284_v8 }
  0x4e   :  { %467 = vmatprep.subr.bf16.mxu0 %v762_v19  ;;  %510 = vmatprep.subr.bf16.mxu1 %v765_v20  ;;  %p935_p0 = por %p934_p13, %p933_p12 }
  0x4f   :  { %v286_v14 = vrot.slane %v281_v12, %v285_v10  ;;  %v294_v15 = vrot.slane %v281_v12, %v293_v11  ;;  %v290_v16 = vrot.slane %v281_v12, %v289_v13 }
  0x50   :  { %p936_p1 = pnand %p935_p0, %p929_p11 }
  0x51   :  { %468 = vmatpush1.bf16.msra.mxu0 %v760_v21  ;;  %511 = vmatpush1.bf16.msra.mxu1 %v763_v22 }
  0x52   :  { %469 = vmatprep.subr.bf16.mxu0 %v768_v23  ;;  %512 = vmatprep.subr.bf16.mxu1 %v771_v24 }
  0x55   :  { %470 = vmatpush1.bf16.msra.mxu0 %v766_v25  ;;  %513 = vmatpush1.bf16.msra.mxu1 %v769_v26 }
  0x56   :  { %471 = vmatprep.subr.bf16.mxu0 %v774_v27  ;;  %514 = vmatprep.subr.bf16.mxu1 %v777_v28 }
  0x59   :  { %472 = vmatpush1.bf16.msra.mxu0 %v772_v29  ;;  %515 = vmatpush1.bf16.msra.mxu1 %v775_v30 }
  0x5a   :  { %473 = vmatprep.subr.bf16.mxu0 %v780_v31  ;;  %516 = vmatprep.subr.bf16.mxu1 %v783_v32 }
  0x5d   :  { %474 = vmatpush1.bf16.msra.mxu0 %v778_v33  ;;  %517 = vmatpush1.bf16.msra.mxu1 %v781_v34 }
  0x5e   :  { %475 = vmatprep.subr.bf16.mxu0 %v786_v35  ;;  %518 = vmatprep.subr.bf16.mxu1 %v789_v36 }
  0x61   :  { %476 = vmatpush1.bf16.msra.mxu0 %v784_v37  ;;  %519 = vmatpush1.bf16.msra.mxu1 %v787_v38 }
  0x62   :  { %477 = vmatprep.subr.bf16.mxu0 %v792_v39  ;;  %520 = vmatprep.subr.bf16.mxu1 %v795_v40 }
  0x65   :  { %478 = vmatpush1.bf16.msra.mxu0 %v790_v41  ;;  %521 = vmatpush1.bf16.msra.mxu1 %v793_v42 }
 0x108   :  { %v166_v44 = vpop.f32.mrf.mxu0  ;;  %v222_v45 = vpop.f32.mrf.mxu1 }
 0x109   :  { %v223_v47 = vadd.f32 %v222_v45, %v166_v44 }
 0x10a   :  { %v719_v48 = vpop.f32.mrf.mxu0  ;;  %v727_v49 = vpop.f32.mrf.mxu1 }
 0x10b   :  { %v236_v50 = vadd.f32 %v666_v46, %v223_v47  ;;  %v297_v48 = vsub.s32 3, %v284_v8 }
 0x10c   :  { %v169_v51 = vpop.f32.mrf.mxu0  ;;  %v225_v52 = vpop.f32.mrf.mxu1 }
 0x10d   :  { %v240_v53 = vmul.f32 0.70710677, %v236_v50  ;;  %v226_v54 = vadd.f32 %v225_v52, %v169_v51  ;;  %v238_v62 = vmul.f32 0.5, %v236_v50  ;;  %v298_v49 = vrot.slane %v281_v12, %v297_v48 }
 0x10e   :  { %v720_v55 = vpop.f32.mrf.mxu0  ;;  %v728_v56 = vpop.f32.mrf.mxu1 }
 0x10f   :  { %796 = verf.f32 %v240_v53  ;;  %v237_v57 = vadd.f32 %v666_v46, %v226_v54 }
 0x111   :  { %v241_v58 = vmul.f32 0.70710677, %v237_v57  ;;  %v239_v63 = vmul.f32 0.5, %v237_v57 }
 0x113   :  { %798 = verf.f32 %v241_v58 }
 0x11c   :  { %v797_v59 = vpop.eup %796 }
 0x11d   :  { %v244_v60 = vadd.f32 1.0, %v797_v59 }
 0x11f   :  { %v246_v1 = vmul.f32 %v244_v60, %v238_v62 }
 0x120   :  { %v799_v61 = vpop.eup %798 }
 0x121   :  { %v245_v0 = vadd.f32 1.0, %v799_v61 }
 0x123   :  { %v247_v2 = vmul.f32 %v245_v0, %v239_v63 }
 0x125   :  { %v248_v3 = vpack.c.bf16 %v247_v2, %v246_v1 }
 0x127   :  { %496 = vmatmul.mubr.bf16.vlgmr.msra.gmra.mxu0 %v248_v3  ;;  %539 = vmatmul.mubr.bf16.vlgmr.msra.gmra.mxu1 %v248_v3 }
 0x1e7   :  { %v497_v17 = vpop.f32.mrf.mxu0  ;;  %v540_v18 = vpop.f32.mrf.mxu1 }
 0x1e8   :  { %v498_v19 = vadd.f32 %v497_v17, %v286_v14  ;;  %v541_v20 = vadd.f32 %v540_v18, %v294_v15 }
 0x1e9   :  { %v499_v21 = vpop.f32.mrf.mxu0  ;;  %v542_v22 = vpop.f32.mrf.mxu1 }
 0x1ea   :  { %v699_v23 = vmul.f32 -1.442695, %v498_v19  ;;  %v703_v24 = vmul.f32 -1.442695, %v541_v20  ;;  %v500_v25 = vadd.f32 %v499_v21, %v290_v16  ;;  %v543_v53 = vadd.f32 %v542_v22, %v298_v49 }
 0x1eb   :  { %v501_v26 = vpop.f32.mrf.mxu0  ;;  %v544_v27 = vpop.f32.mrf.mxu1 }
 0x1ec   :  { %800 = vpow2.f32 %v699_v23  ;;  %v701_v28 = vmul.f32 -1.442695, %v500_v25  ;;  %v502_v29 = vadd.f32 %v501_v26, %v286_v14  ;;  %v545_v30 = vadd.f32 %v544_v27, %v294_v15  ;;  %v706_v26 = vld [vmem:[%s1092_s8] ss:$0 sm:$0xff] }
 0x1ed   :  { %802 = vpow2.f32 %v703_v24  ;;  %v503_v31 = vpop.f32.mrf.mxu0  ;;  %v546_v57 = vpop.f32.mrf.mxu1  ;;  %v705_v24 = vld [vmem:[%s1091_s7] ss:$0 sm:$0xff] }
 0x1ee   :  { %804 = vpow2.f32 %v701_v28  ;;  %v700_v32 = vmul.f32 -1.442695, %v502_v29  ;;  %v704_v33 = vmul.f32 -1.442695, %v545_v30  ;;  %v504_v34 = vadd.f32 %v503_v31, %v290_v16 }
 0x1ef   :  { %v547_v62 = vadd.f32 %v546_v57, %v298_v49 }
 0x1f0   :  { %806 = vpow2.f32 %v700_v32  ;;  %v702_v35 = vmul.f32 -1.442695, %v504_v34 }
 0x1f1   :  { %808 = vpow2.f32 %v704_v33 }
 0x1f2   :  { %810 = vpow2.f32 %v702_v35 }
 0x1f9   :  { %v801_v36 = vpop.eup %800 }
 0x1fa   :  { %v803_v37 = vpop.eup %802  ;;  %v555_v38 = vadd.f32 1.0, %v801_v36 }
 0x1fb   :  { %v805_v39 = vpop.eup %804  ;;  %v579_v40 = vadd.f32 1.0, %v803_v37 }
 0x1fc   :  { %812 = vrcp.f32 %v555_v38  ;;  %v567_v41 = vadd.f32 1.0, %v805_v39 }
 0x1fd   :  { %v807_v42 = vpop.eup %806  ;;  %814 = vrcp.f32 %v579_v40 }
 0x1fe   :  { %v809_v43 = vpop.eup %808  ;;  %816 = vrcp.f32 %v567_v41  ;;  %v556_v44 = vadd.f32 1.0, %v807_v42 }
 0x1ff   :  { %v811_v45 = vpop.eup %810  ;;  %v580_v46 = vadd.f32 1.0, %v809_v43 }
 0x200   :  { %818 = vrcp.f32 %v556_v44  ;;  %v568_v47 = vadd.f32 1.0, %v811_v45 }
 0x201   :  { %820 = vrcp.f32 %v580_v46 }
 0x202   :  { %822 = vrcp.f32 %v568_v47 }
 0x209   :  { %v813_v50 = vpop.eup %812 }
 0x20a   :  { %v815_v51 = vpop.eup %814  ;;  %v585_v54 = vmul.f32 %v813_v50, %v1046_v7 }
 0x20b   :  { %v817_v52 = vpop.eup %816  ;;  %v591_v59 = vmul.f32 %v815_v51, %v543_v53 }
 0x20c   :  { %v587_v55 = vmul.f32 %v817_v52, %v1042_v5 }
 0x20d   :  { %v819_v56 = vpop.eup %818 }
 0x20e   :  { %v821_v58 = vpop.eup %820  ;;  %v589_v60 = vadd.f32 %v587_v55, %v585_v54  ;;  %v586_v0 = vmul.f32 %v819_v56, %v1050_v9 }
 0x20f   :  { %v823_v61 = vpop.eup %822  ;;  %v592_v2 = vmul.f32 %v821_v58, %v547_v62 }
 0x210   :  { %v593_v63 = vadd.f32 %v591_v59, %v589_v60  ;;  %v588_v1 = vmul.f32 %v823_v61, %v1044_v6 }
 0x212   :  { %v595_v3 = vsel %vm128_vm1, %v593_v63, 0.0  ;;  %v590_v4 = vadd.f32 %v588_v1, %v586_v0 }
 0x213   :  { %596 = vadd.xlane.f32.xlu0 %v595_v3 }
 0x214   :  { %v594_v7 = vadd.f32 %v592_v2, %v590_v4 }
 0x216   :  { %v598_v5 = vsel %vm128_vm1, %v594_v7, 0.0 }
 0x217   :  { %599 = vadd.xlane.f32.xlu0 %v598_v5 }
 0x29c   :  { %v597_v8 = vpop.xlane.xlu0 %596 }
 0x29d   :  { %v601_v10 = vmul.f32 0.03125, %v597_v8 }
 0x29f   :  { %v603_v11 = vsub.f32 %v593_v63, %v601_v10 }
 0x2a0   :  { %v600_v12 = vpop.xlane.xlu0 %599 }
 0x2a1   :  { %v602_v13 = vmul.f32 0.03125, %v600_v12  ;;  %v605_v14 = vmul.f32 %v603_v11, %v603_v11 }
 0x2a3   :  { %v604_v15 = vsub.f32 %v594_v7, %v602_v13  ;;  %v607_v9 = vsel %vm128_vm1, %v605_v14, 0.0 }
 0x2a4   :  { %608 = vadd.xlane.f32.xlu1 %v607_v9 }
 0x2a5   :  { %v606_v6 = vmul.f32 %v604_v15, %v604_v15 }
 0x2a7   :  { %v610_v16 = vsel %vm128_vm1, %v606_v6, 0.0 }
 0x2a8   :  { %611 = vadd.xlane.f32.xlu1 %v610_v16 }
 0x32d   :  { %v609_v17 = vpop.xlane.xlu1 %608 }
 0x32e   :  { %v613_v18 = vmul.f32 0.03125, %v609_v17 }
 0x330   :  { %v615_v19 = vadd.f32 1e-05, %v613_v18 }
 0x331   :  { %v612_v20 = vpop.xlane.xlu1 %611 }
 0x332   :  { %824 = vrsqrt.f32 %v615_v19  ;;  %v614_v21 = vmul.f32 0.03125, %v612_v20 }
 0x334   :  { %v616_v22 = vadd.f32 1e-05, %v614_v21 }
 0x336   :  { %826 = vrsqrt.f32 %v616_v22 }
 0x33f   :  { %v825_v23 = vpop.eup %824 }
 0x340   :  { %v619_v25 = vmul.f32 %v825_v23, %v603_v11 }
 0x342   :  { %v628_v27 = vmul.f32 %v705_v24, %v619_v25 }
 0x343   :  { %v827_v28 = vpop.eup %826 }
 0x344   :  { %v620_v29 = vmul.f32 %v827_v28, %v604_v15  ;;  %v637_v30 = vadd.f32 %v706_v26, %v628_v27 }
 0x346   :  { %v629_v31 = vmul.f32 %v705_v24, %v620_v29  ;;  %639 = vst.msk [vmem:[#allocation11] sm:$0xff] %vm128_vm1, %v637_v30 }
 0x348   :  { %v638_v32 = vadd.f32 %v706_v26, %v629_v31 }
 0x34a   :  { %640 = vst.msk [vmem:[#allocation11 + $0x8] sm:$0xff] %vm128_vm1, %v638_v32 }
 0x34b   :  { %939 = shalt.err (!%p936_p1)
}
 0x34c   :  { %652 = dma.vmem_to_hbm [thread:$0]  %s647_s23, 256, %s1093_s9, [#allocation4], %s957_s12, %s957_s12, %s958_s13  }
 0x34d   :  { %954 = dma.done.wait [#allocation4], 256  }
 0x34e   :  { %955 = vsyncadd [#allocation4], 4294967040 }
 0x34f   :  { %656 = vsyncpa [#allocation3], 1 }
 0x350   :  { %657 = vsyncpa [#allocation6], 1 }
 0x351   :  { %658 = vsyncpa [#allocation9], 1 }
 0x352   :  { %659 = vsyncpa [#allocation4], 1 }

</bundles_post_ra>
